<compile_context>
chip_gen: v7x
topology: tpu7x:2x2x1
jax: 0.10.0
libtpu: 0.0.40
codegen_flags: <defaults>
</compile_context>

<pallas_src>
import jax
import jax.numpy as jnp
from jax.experimental import pallas as pl
from jax.experimental.pallas import tpu as pltpu


def _round_up(n: int, m: int) -> int:
    return ((n + m - 1) // m) * m


def _batch_tiling(B: int):
    """Pick (TB, B_p): TB a multiple of 16 (bf16 sublane tile), <= 512 rows.

    Scoring: minimize padded rows first (avoid the old up-to-~2x overshoot),
    then prefer an even number (>=2) of grid steps (v7x megacore: both
    TensorCores busy), then fewer steps (amortize per-step pipeline overhead).
    """
    B16 = _round_up(B, 16)
    best = None
    for tb in range(16, 513, 16):
        b_p = _round_up(B16, tb)
        steps = b_p // tb
        waste = b_p - B
        odd_penalty = 0 if (steps >= 2 and steps % 2 == 0) else 1
        key = (waste, odd_penalty, steps)
        if best is None or key < best[0]:
            best = (key, tb, b_p)
    _, tb, b_p = best
    return tb, b_p


def _mlp_kernel(x_ref, w1_ref, b1_ref, w2_ref, b2_ref, w3_ref, b3_ref, o_ref):
    # x may arrive in its producer dtype (e.g. f32) -> cast to bf16 in VMEM.
    x = x_ref[...].astype(jnp.bfloat16)
    # Layer 0: Linear (bf16 MXU, f32 accum) + bias/ReLU in f32
    h1 = jnp.dot(x, w1_ref[...], preferred_element_type=jnp.float32)
    h1 = jnp.maximum(h1 + b1_ref[...], 0.0).astype(jnp.bfloat16)
    # Layer 1: Linear + ReLU
    h2 = jnp.dot(h1, w2_ref[...], preferred_element_type=jnp.float32)
    h2 = jnp.maximum(h2 + b2_ref[...], 0.0).astype(jnp.bfloat16)
    # Output layer: Linear (no activation)
    out = jnp.dot(h2, w3_ref[...], preferred_element_type=jnp.float32)
    o_ref[...] = (out + b3_ref[...]).astype(o_ref.dtype)


def prepare_params(params):
    """One-time padding + bf16 cast of the weights/biases.

    Call this ONCE (outside the per-forward path) so the ~MiB of padded
    weights are staged in HBM a single time instead of being rebuilt and
    re-read on every call.  Padded rows/cols are exactly 0, so the math is
    unchanged and stays 0 through ReLU.
    """
    w1, b1 = params["w1"], params["b1"]
    w2, b2 = params["w2"], params["b2"]
    w3, b3 = params["w3"], params["b3"]
    D, H1 = w1.shape
    H2 = w2.shape[1]
    C = w3.shape[1]
    D_p, H1_p, H2_p, C_p = (_round_up(d, 128) for d in (D, H1, H2, C))

    def pad2(a, rows, cols, dtype):
        a = a.astype(dtype)
        return jnp.pad(a, ((0, rows - a.shape[0]), (0, cols - a.shape[1])))

    return {
        "w1": pad2(w1, D_p, H1_p, jnp.bfloat16),
        "w2": pad2(w2, H1_p, H2_p, jnp.bfloat16),
        "w3": pad2(w3, H2_p, C_p, jnp.bfloat16),
        "b1": pad2(b1.reshape(1, -1), 1, H1_p, jnp.float32),
        "b2": pad2(b2.reshape(1, -1), 1, H2_p, jnp.float32),
        "b3": pad2(b3.reshape(1, -1), 1, C_p, jnp.float32),
        "dims": (D, H1, H2, C),  # true (unpadded) dims, static python ints
    }


def incoming_noisy_mlp_forward(x, prepared):
    """x: [B, C, H, W] (or already-flat [B, D]). prepared: prepare_params() output."""
    B = x.shape[0]
    x2d = x.reshape(B, -1)  # == torch x.view(x.size(0), -1)
    D, H1, H2, C = prepared["dims"]
    assert x2d.shape[1] == D, f"flattened input dim {x2d.shape[1]} != {D}"

    w1, w2, w3 = prepared["w1"], prepared["w2"], prepared["w3"]
    b1, b2, b3 = prepared["b1"], prepared["b2"], prepared["b3"]
    D_p, H1_p = w1.shape
    H2_p, C_p = w3.shape

    TB, B_p = _batch_tiling(B)
    grid = (B_p // TB,)

    # Avoid a full zero-initialized staging copy of x.
    if B_p == B and D_p == D:
        x_in = x2d                      # no copy; cast to bf16 inside the kernel
    else:
        x_in = jnp.pad(x2d.astype(jnp.bfloat16),
                       ((0, B_p - B), (0, D_p - D)))

    flops = 2 * B_p * (D_p * H1_p + H1_p * H2_p + H2_p * C_p)
    bytes_accessed = (
        x_in.size * x_in.dtype.itemsize
        + sum(int(a.size) * a.dtype.itemsize for a in (w1, w2, w3, b1, b2, b3))
        + B_p * C_p * 4)

    # Weights/biases: same block every grid step -> stay VMEM-resident; they
    # are fetched once, so single-buffer them (saves ~1 MiB of VMEM headroom).
    resident = lambda i: (0, 0)
    res_spec = lambda shape: pl.BlockSpec(shape, resident,
                                          pipeline_mode=pl.Buffered(1))

    out_p = pl.pallas_call(
        _mlp_kernel,
        out_shape=jax.ShapeDtypeStruct((B_p, C_p), jnp.float32),
        grid=grid,
        in_specs=[
            pl.BlockSpec((TB, D_p), lambda i: (i, 0)),   # x: tiled over batch
            res_spec((D_p, H1_p)),
            res_spec((1, H1_p)),
            res_spec((H1_p, H2_p)),
            res_spec((1, H2_p)),
            res_spec((H2_p, C_p)),
            res_spec((1, C_p)),
        ],
        out_specs=pl.BlockSpec((TB, C_p), lambda i: (i, 0)),
        compiler_params=pltpu.CompilerParams(
            dimension_semantics=("parallel",),  # megacore-shard batch steps
        ),
        cost_estimate=pl.CostEstimate(
            flops=flops, transcendentals=0, bytes_accessed=bytes_accessed),
    )(x_in, w1, b1, w2, b2, w3, b3)

    # Strip batch / class padding outside the kernel.
    return out_p[:B, :C]


def init_params(key, input_dim, layer_dims, n_cls):
    """Deterministic init matching nn.Linear's default U(-1/sqrt(fan_in), +1/sqrt(fan_in))."""
    dims = [input_dim] + list(layer_dims) + [n_cls]
    params = {}
    for i in range(len(dims) - 1):
        fan_in, fan_out = dims[i], dims[i + 1]
        key, kw, kb = jax.random.split(key, 3)
        bound = 1.0 / jnp.sqrt(fan_in)
        # stored as [in, out] so the kernel does x @ W
        params[f"w{i+1}"] = jax.random.uniform(
            kw, (fan_in, fan_out), jnp.float32, -bound, bound)
        params[f"b{i+1}"] = jax.random.uniform(
            kb, (1, fan_out), jnp.float32, -bound, bound)
    return params


def _reference_forward_bf16(x, params):
    """Plain-JAX reference with the same bf16-matmul / f32-accumulate recipe."""
    h = x.reshape(x.shape[0], -1).astype(jnp.bfloat16)
    h = jnp.dot(h, params["w1"].astype(jnp.bfloat16),
                preferred_element_type=jnp.float32)
    h = jnp.maximum(h + params["b1"], 0.0).astype(jnp.bfloat16)
    h = jnp.dot(h, params["w2"].astype(jnp.bfloat16),
                preferred_element_type=jnp.float32)
    h = jnp.maximum(h + params["b2"], 0.0).astype(jnp.bfloat16)
    h = jnp.dot(h, params["w3"].astype(jnp.bfloat16),
                preferred_element_type=jnp.float32)
    return h + params["b3"]


def _reference_forward_f32(x, params):
    h = x.reshape(x.shape[0], -1)
    h = jnp.maximum(h @ params["w1"] + params["b1"], 0.0)
    h = jnp.maximum(h @ params["w2"] + params["b2"], 0.0)
    return h @ params["w3"] + params["b3"]


if __name__ == "__main__":
    key = jax.random.PRNGKey(0)
    kx, kp = jax.random.split(key)

    # Example: image-like NCHW input -> flattened input_dim = 4*16*16 = 1024
    B, C, H, W = 2, 4, 16, 16
    input_dim = C * H * W
    layer_dims = (300, 100)
    n_cls = 10

    x = jax.random.normal(kx, (B, C, H, W), jnp.float32)
    params = init_params(kp, input_dim, layer_dims, n_cls)

    # One-time weight staging (hoisted out of the per-call path).
    prepared = prepare_params(params)
    prepared = jax.tree_util.tree_map(
        lambda a: jax.block_until_ready(a) if isinstance(a, jax.Array) else a,
        prepared)

    out = incoming_noisy_mlp_forward(x, prepared)
    out = jax.block_until_ready(out)

    assert out.shape == (B, n_cls)

    ref_bf16 = _reference_forward_bf16(x, params)
    assert jnp.allclose(out, ref_bf16, atol=1e-2, rtol=1e-2), \
        "mismatch vs bf16-matmul JAX reference"

    ref_f32 = _reference_forward_f32(x, params)
    assert jnp.allclose(out, ref_f32, atol=1e-1, rtol=1e-1), \
        "mismatch vs f32 JAX reference (bf16 rounding exceeded loose tolerance)"

    print("KERNEL_OK")
</pallas_src>

<mosaic_0001>
module attributes {stable_mosaic.version = 11 : i64} {
  func.func @_mlp_kernel(%arg0: i32, %arg1: memref<16x1024xbf16, #tpu.memory_space<vmem>>, %arg2: memref<1024x384xbf16, #tpu.memory_space<vmem>>, %arg3: memref<1x384xf32, #tpu.memory_space<vmem>>, %arg4: memref<384x128xbf16, #tpu.memory_space<vmem>>, %arg5: memref<1x128xf32, #tpu.memory_space<vmem>>, %arg6: memref<128x128xbf16, #tpu.memory_space<vmem>>, %arg7: memref<1x128xf32, #tpu.memory_space<vmem>>, %arg8: memref<16x128xf32, #tpu.memory_space<vmem>>) attributes {dimension_semantics = [#tpu.dimension_semantics<parallel>], iteration_bounds = array<i64: 1>, scalar_prefetch = 0 : i64, scratch_operands = 0 : i64, tpu.core_type = #tpu.core_type<tc>, window_params = [{transform_indices = @transform_0, window_bounds = array<i64: 16, 1024>}, {pipeline_mode = #tpu.pipeline_mode<synchronous>, transform_indices = @transform_1, window_bounds = array<i64: 1024, 384>}, {pipeline_mode = #tpu.pipeline_mode<synchronous>, transform_indices = @transform_2, window_bounds = array<i64: 1, 384>}, {pipeline_mode = #tpu.pipeline_mode<synchronous>, transform_indices = @transform_3, window_bounds = array<i64: 384, 128>}, {pipeline_mode = #tpu.pipeline_mode<synchronous>, transform_indices = @transform_4, window_bounds = array<i64: 1, 128>}, {pipeline_mode = #tpu.pipeline_mode<synchronous>, transform_indices = @transform_5, window_bounds = array<i64: 128, 128>}, {pipeline_mode = #tpu.pipeline_mode<synchronous>, transform_indices = @transform_6, window_bounds = array<i64: 1, 128>}, {transform_indices = @transform_7, window_bounds = array<i64: 16, 128>}]} {
    %c0 = arith.constant 0 : index
    %c0_0 = arith.constant 0 : index
    %0 = vector.load %arg1[%c0, %c0_0] : memref<16x1024xbf16, #tpu.memory_space<vmem>>, vector<16x1024xbf16>
    %c0_1 = arith.constant 0 : index
    %c0_2 = arith.constant 0 : index
    %1 = vector.load %arg2[%c0_1, %c0_2] : memref<1024x384xbf16, #tpu.memory_space<vmem>>, vector<1024x384xbf16>
    %cst = arith.constant dense<0.000000e+00> : vector<16x384xf32>
    %2 = tpu.matmul %0, %1, %cst {dimension_numbers = #tpu.dot_dimension_numbers<[1], [0], [0], [1], [0, 0, 1, 1], [], []>} : vector<16x1024xbf16>, vector<1024x384xbf16>, vector<16x384xf32> -> vector<16x384xf32>
    %c0_3 = arith.constant 0 : index
    %c0_4 = arith.constant 0 : index
    %3 = vector.load %arg3[%c0_3, %c0_4] : memref<1x384xf32, #tpu.memory_space<vmem>>, vector<1x384xf32>
    %4 = vector.broadcast %3 : vector<1x384xf32> to vector<16x384xf32>
    %5 = arith.addf %2, %4 : vector<16x384xf32>
    %cst_5 = arith.constant 0.000000e+00 : f32
    %6 = vector.broadcast %cst_5 : f32 to vector<16x384xf32>
    %7 = arith.maximumf %5, %6 : vector<16x384xf32>
    %8 = arith.truncf %7 : vector<16x384xf32> to vector<16x384xbf16>
    %c0_6 = arith.constant 0 : index
    %c0_7 = arith.constant 0 : index
    %9 = vector.load %arg4[%c0_6, %c0_7] : memref<384x128xbf16, #tpu.memory_space<vmem>>, vector<384x128xbf16>
    %cst_8 = arith.constant dense<0.000000e+00> : vector<16x128xf32>
    %10 = tpu.matmul %8, %9, %cst_8 {dimension_numbers = #tpu.dot_dimension_numbers<[1], [0], [0], [1], [0, 0, 1, 1], [], []>} : vector<16x384xbf16>, vector<384x128xbf16>, vector<16x128xf32> -> vector<16x128xf32>
    %c0_9 = arith.constant 0 : index
    %c0_10 = arith.constant 0 : index
    %11 = vector.load %arg5[%c0_9, %c0_10] : memref<1x128xf32, #tpu.memory_space<vmem>>, vector<1x128xf32>
    %12 = vector.broadcast %11 : vector<1x128xf32> to vector<16x128xf32>
    %13 = arith.addf %10, %12 : vector<16x128xf32>
    %cst_11 = arith.constant 0.000000e+00 : f32
    %14 = vector.broadcast %cst_11 : f32 to vector<16x128xf32>
    %15 = arith.maximumf %13, %14 : vector<16x128xf32>
    %16 = arith.truncf %15 : vector<16x128xf32> to vector<16x128xbf16>
    %c0_12 = arith.constant 0 : index
    %c0_13 = arith.constant 0 : index
    %17 = vector.load %arg6[%c0_12, %c0_13] : memref<128x128xbf16, #tpu.memory_space<vmem>>, vector<128x128xbf16>
    %cst_14 = arith.constant dense<0.000000e+00> : vector<16x128xf32>
    %18 = tpu.matmul %16, %17, %cst_14 {dimension_numbers = #tpu.dot_dimension_numbers<[1], [0], [0], [1], [0, 0, 1, 1], [], []>} : vector<16x128xbf16>, vector<128x128xbf16>, vector<16x128xf32> -> vector<16x128xf32>
    %c0_15 = arith.constant 0 : index
    %c0_16 = arith.constant 0 : index
    %19 = vector.load %arg7[%c0_15, %c0_16] : memref<1x128xf32, #tpu.memory_space<vmem>>, vector<1x128xf32>
    %20 = vector.broadcast %19 : vector<1x128xf32> to vector<16x128xf32>
    %21 = arith.addf %18, %20 : vector<16x128xf32>
    %c0_17 = arith.constant 0 : index
    %c0_18 = arith.constant 0 : index
    %22 = vector.load %arg8[%c0_17, %c0_18] : memref<16x128xf32, #tpu.memory_space<vmem>>, vector<16x128xf32>
    tpu.vector_store %arg8[%c0_17, %c0_18], %21 {strides = array<i32>} : memref<16x128xf32, #tpu.memory_space<vmem>>, vector<16x128xf32>,
    return
  }
  func.func @transform_0(%arg0: i32) -> (i32, i32) {
    %c0_i32 = arith.constant 0 : i32
    %c0_i32_0 = arith.constant 0 : i32
    return %arg0, %c0_i32 : i32, i32
  }
  func.func @transform_1(%arg0: i32) -> (i32, i32) {
    %c0_i32 = arith.constant 0 : i32
    %c0_i32_0 = arith.constant 0 : i32
    %c0_i32_1 = arith.constant 0 : i32
    return %c0_i32, %c0_i32_0 : i32, i32
  }
  func.func @transform_2(%arg0: i32) -> (i32, i32) {
    %c0_i32 = arith.constant 0 : i32
    %c0_i32_0 = arith.constant 0 : i32
    %c0_i32_1 = arith.constant 0 : i32
    return %c0_i32, %c0_i32_0 : i32, i32
  }
  func.func @transform_3(%arg0: i32) -> (i32, i32) {
    %c0_i32 = arith.constant 0 : i32
    %c0_i32_0 = arith.constant 0 : i32
    %c0_i32_1 = arith.constant 0 : i32
    return %c0_i32, %c0_i32_0 : i32, i32
  }
  func.func @transform_4(%arg0: i32) -> (i32, i32) {
    %c0_i32 = arith.constant 0 : i32
    %c0_i32_0 = arith.constant 0 : i32
    %c0_i32_1 = arith.constant 0 : i32
    return %c0_i32, %c0_i32_0 : i32, i32
  }
  func.func @transform_5(%arg0: i32) -> (i32, i32) {
    %c0_i32 = arith.constant 0 : i32
    %c0_i32_0 = arith.constant 0 : i32
    %c0_i32_1 = arith.constant 0 : i32
    return %c0_i32, %c0_i32_0 : i32, i32
  }
  func.func @transform_6(%arg0: i32) -> (i32, i32) {
    %c0_i32 = arith.constant 0 : i32
    %c0_i32_0 = arith.constant 0 : i32
    %c0_i32_1 = arith.constant 0 : i32
    return %c0_i32, %c0_i32_0 : i32, i32
  }
  func.func @transform_7(%arg0: i32) -> (i32, i32) {
    %c0_i32 = arith.constant 0 : i32
    %c0_i32_0 = arith.constant 0 : i32
    return %arg0, %c0_i32 : i32, i32
  }
}

</mosaic_0001>

<bundles_post_ra>
// kernel: tpu_custom_call.1
= control target key start
LH: loop header
LB: loop body
LE: loop exit
PB: predicated region body
PF: predicated region fallthrough
CT: control target
= control target key end

     0   :  { %12 = vsyncpa [#allocation3], 0  ;;  %s3201_s0 = inlined_call_operand.hbm [shape: bf16[16,1024], index: 0, kind: input, shape index: {}]   ;;  %s3202_s1 = inlined_call_operand.hbm [shape: bf16[1024,384], index: 1, kind: input, shape index: {}]   ;;  %s3203_s2 = inlined_call_operand.vmem [shape: f32[1,384], index: 2, kind: input, shape index: {}]   ;;  %s3204_s3 = inlined_call_operand.hbm [shape: bf16[384,128], index: 3, kind: input, shape index: {}]   ;;  %s3205_s4 = inlined_call_operand.vmem [shape: f32[1,128], index: 4, kind: input, shape index: {}]   ;;  %s3206_s5 = inlined_call_operand.hbm [shape: bf16[128,128], index: 5, kind: input, shape index: {}]   ;;  %s3207_s6 = inlined_call_operand.vmem [shape: f32[1,128], index: 6, kind: input, shape index: {}]   ;;  %s3208_s7 = inlined_call_operand.hbm [shape: f32[16,128], index: 7, kind: output, shape index: {}]  }
   0x1   :  { %13 = vsyncpa [#allocation6], 0 }
   0x2   :  { %14 = vsyncpa [#allocation9], 0 }
   0x3   :  { %15 = vsyncpa [#allocation4], 0  ;;  %s3029_s24 = smov [#allocation5]   ;;  %s2911_s28 = scalar_lea.hbm %s3202_s1, 24576 }
   0x4   :  { %s33_s25 = sshll.u32 %s3029_s24, 4  ;;  %p2912_p0 = scmp.ne.s32.totalorder %s3202_s1, %s2911_s28  ;;  %s34_s25 = int_to_ptr.vmem [resolvable:$true] %s33_s25 }
   0x5   :  { %p2915_p1 = scmp.lt.u32.totalorder %s2911_s28, %s3202_s1 }
   0x7   :  { %p2917_p2 = pnand %p2915_p1, %p2912_p0 }
   0x9   :  { %2920 = shalt.err (!%p2917_p2)
}
   0xa   :  { %s2921_s10 = scalar_lea.vmem %s34_s25, 24576  ;;  %p2926_p4 = scmp.lt.s32.totalorder %s34_s25, %s34_s25 }
   0xb   :  { %p2922_p3 = scmp.ne.s32.totalorder %s34_s25, %s2921_s10  ;;  %p2927_p5 = scmp.lt.s32.totalorder %s2921_s10, %s2921_s10 }
   0xd   :  { %p2928_p6 = por %p2927_p5, %p2926_p4 }
   0xf   :  { %p2929_p7 = pnand %p2928_p6, %p2922_p3 }
  0x11   :  { %2932 = shalt.err (!%p2929_p7)
}
  0x12   :  { %s3030_s11 = smov 192   ;;  %s3031_s12 = smov 12  }
  0x13   :  { %39 = dma.hbm_to_vmem [thread:$0]  %s3202_s1, 24576, %s34_s25, [#allocation6], %s3030_s11, %s3030_s11, %s3031_s12  }
  0x14   :  { %s3032_s15 = smov [#allocation2]   ;;  %s2933_s19 = scalar_lea.hbm %s3201_s0, 1024 }
  0x15   :  { %s21_s16 = sshll.u32 %s3032_s15, 4  ;;  %p2934_p8 = scmp.ne.s32.totalorder %s3201_s0, %s2933_s19  ;;  %s22_s16 = int_to_ptr.vmem [resolvable:$true] %s21_s16 }
  0x16   :  { %p2937_p9 = scmp.lt.u32.totalorder %s2933_s19, %s3201_s0 }
  0x18   :  { %p2939_p10 = pnand %p2937_p9, %p2934_p8 }
  0x1a   :  { %2942 = shalt.err (!%p2939_p10)
}
  0x1b   :  { %s2943_s24 = scalar_lea.vmem %s22_s16, 1024  ;;  %p2948_p12 = scmp.lt.s32.totalorder %s22_s16, %s22_s16 }
  0x1c   :  { %p2944_p11 = scmp.ne.s32.totalorder %s22_s16, %s2943_s24  ;;  %p2949_p13 = scmp.lt.s32.totalorder %s2943_s24, %s2943_s24 }
  0x1e   :  { %p2950_p0 = por %p2949_p13, %p2948_p12 }
  0x20   :  { %p2951_p1 = pnand %p2950_p0, %p2944_p11 }
  0x22   :  { %2954 = shalt.err (!%p2951_p1)
}
  0x23   :  { %s3033_s1 = smov 512   ;;  %s3034_s25 = smov 32  }
  0x24   :  { %27 = dma.hbm_to_vmem [thread:$0]  %s3201_s0, 1024, %s22_s16, [#allocation3], %s3033_s1, %s3033_s1, %s3034_s25  }
  0x25   :  { %s3035_s28 = smov [#allocation7]   ;;  %s2955_s9 = scalar_lea.hbm %s3204_s3, 3072 }
  0x26   :  { %s47_s29 = sshll.u32 %s3035_s28, 4  ;;  %p2956_p2 = scmp.ne.s32.totalorder %s3204_s3, %s2955_s9  ;;  %s48_s29 = int_to_ptr.vmem [resolvable:$true] %s47_s29 }
  0x27   :  { %p2959_p3 = scmp.lt.u32.totalorder %s2955_s9, %s3204_s3 }
  0x29   :  { %p2961_p4 = pnand %p2959_p3, %p2956_p2 }
  0x2b   :  { %2964 = shalt.err (!%p2961_p4)
}
  0x2c   :  { %s2965_s14 = scalar_lea.vmem %s48_s29, 3072  ;;  %p2970_p6 = scmp.lt.s32.totalorder %s48_s29, %s48_s29 }
  0x2d   :  { %p2966_p5 = scmp.ne.s32.totalorder %s48_s29, %s2965_s14  ;;  %p2971_p7 = scmp.lt.s32.totalorder %s2965_s14, %s2965_s14 }
  0x2f   :  { %p2972_p8 = por %p2971_p7, %p2970_p6 }
  0x31   :  { %p2973_p9 = pnand %p2972_p8, %p2966_p5 }
  0x33   :  { %2976 = shalt.err (!%p2973_p9)
}
  0x34   :  { %s3036_s0 = smov 64   ;;  %s3037_s15 = smov 4  }
  0x35   :  { %53 = dma.hbm_to_vmem [thread:$0]  %s3204_s3, 3072, %s48_s29, [#allocation6], %s3036_s0, %s3036_s0, %s3037_s15  }
  0x36   :  { %s3038_s18 = smov [#allocation8]   ;;  %s2977_s22 = scalar_lea.hbm %s3206_s5, 1024 }
  0x37   :  { %s61_s19 = sshll.u32 %s3038_s18, 4  ;;  %p2978_p10 = scmp.ne.s32.totalorder %s3206_s5, %s2977_s22  ;;  %s62_s19 = int_to_ptr.vmem [resolvable:$true] %s61_s19 }
  0x38   :  { %p2981_p11 = scmp.lt.u32.totalorder %s2977_s22, %s3206_s5 }
  0x3a   :  { %p2983_p12 = pnand %p2981_p11, %p2978_p10 }
  0x3c   :  { %2986 = shalt.err (!%p2983_p12)
}
  0x3d   :  { %s2987_s26 = scalar_lea.vmem %s62_s19, 1024  ;;  %p2992_p0 = scmp.lt.s32.totalorder %s62_s19, %s62_s19 }
  0x3e   :  { %p2988_p13 = scmp.ne.s32.totalorder %s62_s19, %s2987_s26  ;;  %p2993_p1 = scmp.lt.s32.totalorder %s2987_s26, %s2987_s26 }
  0x40   :  { %p2994_p2 = por %p2993_p1, %p2992_p0 }
  0x42   :  { %p2995_p3 = pnand %p2994_p2, %p2988_p13 }
  0x44   :  { %2998 = shalt.err (!%p2995_p3)
}
  0x45   :  { %67 = dma.hbm_to_vmem [thread:$0]  %s3206_s5, 1024, %s62_s19, [#allocation9], %s3036_s0, %s3036_s0, %s3037_s15  }
  0x46   :  { %3021 = dma.done.wait [#allocation3], 1024  }
  0x47   :  { %3022 = vsyncadd [#allocation3], 4294966272 }
  0x48   :  { %3023 = dma.done.wait [#allocation6], 27648  }
  0x49   :  { %3024 = vsyncadd [#allocation6], 4294939648 }
  0x4a   :  { %3025 = dma.done.wait [#allocation9], 1024  }
  0x4b   :  { %3026 = vsyncadd [#allocation9], 4294966272  ;;  %v2623_v0 = vld [vmem:[#allocation5 + $0x4] ss:$12 sps:$4 sm:$0xff]   ;;  %v2625_v1 = vld [vmem:[#allocation5] ss:$12 sps:$4 sm:$0xff]  }
  0x4c   :  { %1428 = vmatprep.subr.bf16.mxu0 %v2623_v0  ;;  %v2626_v2 = vld [vmem:[#allocation5 + $0x1c] ss:$12 sps:$4 sm:$0xff]   ;;  %v2628_v3 = vld [vmem:[#allocation5 + $0x18] ss:$12 sps:$4 sm:$0xff]   ;;  %v2629_v4 = vld [vmem:[#allocation5 + $0x34] ss:$12 sps:$4 sm:$0xff]  }
  0x4d   :  { %1429 = vmatpush1.bf16.msra.mxu0 %v2625_v1  ;;  %v2631_v5 = vld [vmem:[#allocation5 + $0x30] ss:$12 sps:$4 sm:$0xff]   ;;  %v2632_v6 = vld [vmem:[#allocation5 + $0x4c] ss:$12 sps:$4 sm:$0xff]   ;;  %v2634_v7 = vld [vmem:[#allocation5 + $0x48] ss:$12 sps:$4 sm:$0xff]  }
  0x4e   :  { %1430 = vmatprep.subr.bf16.mxu0 %v2626_v2  ;;  %v2635_v8 = vld [vmem:[#allocation5 + $0x64] ss:$12 sps:$4 sm:$0xff]   ;;  %v2637_v9 = vld [vmem:[#allocation5 + $0x60] ss:$12 sps:$4 sm:$0xff]   ;;  %v2638_v10 = vld [vmem:[#allocation5 + $0x7c] ss:$12 sps:$4 sm:$0xff]  }
  0x4f   :  { %v2640_v11 = vld [vmem:[#allocation5 + $0x78] ss:$12 sps:$4 sm:$0xff]   ;;  %v2641_v12 = vld [vmem:[#allocation5 + $0x94] ss:$12 sps:$4 sm:$0xff]   ;;  %v2643_v15 = vld [vmem:[#allocation5 + $0x90] ss:$12 sps:$4 sm:$0xff]  }
  0x50   :  { %v3132_v13 = vld [vmem:[#allocation2] sm:$0xff]  ;;  %v2644_v17 = vld [vmem:[#allocation5 + $0xac] ss:$12 sps:$4 sm:$0xff]   ;;  %v2674_v18 = vld [vmem:[#allocation5 + $0xc8] ss:$12 sps:$4 sm:$0xff]   ;;  %vm3040_vm0 = vmmov 0  }
  0x51   :  { %1431 = vmatpush1.bf16.msra.mxu0 %v2628_v3  ;;  %v3134_v14 = vld [vmem:[#allocation2 + $0x20] sm:$0xff]  ;;  %v2675_v19 = vld [vmem:[#allocation5 + $0x8] ss:$12 sps:$4 sm:$0xff]   ;;  %2424 = vmatprep.subr.bf16.mxu1 %v2674_v18  ;;  %v2689_v29 = vld [vmem:[#allocation5 + $0x110] ss:$12 sps:$4 sm:$0xff]   ;;  %s3041_s9 = smov [#allocation10]  }
  0x52   :  { %1432 = vmatprep.subr.bf16.mxu0 %v2629_v4  ;;  %v2191_v16 = vcombine.high %v3132_v13, %v3134_v14  ;;  %v2646_v20 = vld [vmem:[#allocation5 + $0xa8] ss:$12 sps:$4 sm:$0xff]   ;;  %v2647_v21 = vld [vmem:[#allocation5 + $0xc4] ss:$12 sps:$4 sm:$0xff]   ;;  %2425 = vmatpush3.bf16.msra.mxu1 %v2675_v19  ;;  %v2679_v22 = vld [vmem:[#allocation5 + $0xe0] ss:$12 sps:$4 sm:$0xff]   ;;  %v2190_v52 = vcombine.low %v3132_v13, %v3134_v14 }
  0x53   :  { %v2680_v23 = vld [vmem:[#allocation5 + $0x20] ss:$12 sps:$4 sm:$0xff]   ;;  %2426 = vmatprep.subr.bf16.mxu1 %v2679_v22  ;;  %v2684_v25 = vld [vmem:[#allocation5 + $0xf8] ss:$12 sps:$4 sm:$0xff]   ;;  %v2650_v27 = vld [vmem:[#allocation5 + $0xdc] ss:$12 sps:$4 sm:$0xff]  }
  0x54   :  { %1460 = vmatprep.mubr.bf16.mxu0 %v2191_v16  ;;  %1632 = vmatprep.mubr.bf16.mxu1 %v2191_v16  ;;  %v2649_v24 = vld [vmem:[#allocation5 + $0xc0] ss:$12 sps:$4 sm:$0xff]   ;;  %v2685_v26 = vld [vmem:[#allocation5 + $0x38] ss:$12 sps:$4 sm:$0xff]   ;;  %v2690_v30 = vld [vmem:[#allocation5 + $0x50] ss:$12 sps:$4 sm:$0xff]  }
  0x55   :  { %1433 = vmatpush1.bf16.msra.mxu0 %v2631_v5  ;;  %v2652_v28 = vld [vmem:[#allocation5 + $0xd8] ss:$12 sps:$4 sm:$0xff]   ;;  %v2653_v31 = vld [vmem:[#allocation5 + $0xf4] ss:$12 sps:$4 sm:$0xff]   ;;  %v2655_v33 = vld [vmem:[#allocation5 + $0xf0] ss:$12 sps:$4 sm:$0xff]  }
  0x56   :  { %1434 = vmatprep.subr.bf16.mxu0 %v2632_v6  ;;  %2427 = vmatpush3.bf16.msra.mxu1 %v2680_v23  ;;  %v2694_v32 = vld [vmem:[#allocation5 + $0x128] ss:$12 sps:$4 sm:$0xff]   ;;  %v2656_v34 = vld [vmem:[#allocation5 + $0x10c] ss:$12 sps:$4 sm:$0xff]   ;;  %v2659_v38 = vld [vmem:[#allocation5 + $0x124] ss:$12 sps:$4 sm:$0xff]  }
  0x57   :  { %2428 = vmatprep.subr.bf16.mxu1 %v2684_v25  ;;  %v2695_v35 = vld [vmem:[#allocation5 + $0x68] ss:$12 sps:$4 sm:$0xff]   ;;  %v2699_v36 = vld [vmem:[#allocation5 + $0x140] ss:$12 sps:$4 sm:$0xff]   ;;  %v2704_v40 = vld [vmem:[#allocation5 + $0x158] ss:$12 sps:$4 sm:$0xff]  }
  0x58   :  { %v2658_v37 = vld [vmem:[#allocation5 + $0x108] ss:$12 sps:$4 sm:$0xff]   ;;  %v2700_v39 = vld [vmem:[#allocation5 + $0x80] ss:$12 sps:$4 sm:$0xff]   ;;  %v2705_v43 = vld [vmem:[#allocation5 + $0x98] ss:$12 sps:$4 sm:$0xff]  }
  0x59   :  { %1435 = vmatpush1.bf16.msra.mxu0 %v2634_v7  ;;  %v2661_v41 = vld [vmem:[#allocation5 + $0x120] ss:$12 sps:$4 sm:$0xff]   ;;  %v2662_v42 = vld [vmem:[#allocation5 + $0x13c] ss:$12 sps:$4 sm:$0xff]   ;;  %v2664_v45 = vld [vmem:[#allocation5 + $0x138] ss:$12 sps:$4 sm:$0xff]  }
  0x5a   :  { %1436 = vmatprep.subr.bf16.mxu0 %v2635_v8  ;;  %2429 = vmatpush3.bf16.msra.mxu1 %v2685_v26  ;;  %v2709_v44 = vld [vmem:[#allocation5 + $0x170] ss:$12 sps:$4 sm:$0xff]   ;;  %v2665_v46 = vld [vmem:[#allocation5 + $0x154] ss:$12 sps:$4 sm:$0xff]   ;;  %v2668_v51 = vld [vmem:[#allocation5 + $0x16c] ss:$12 sps:$4 sm:$0xff]  }
  0x5b   :  { %2430 = vmatprep.subr.bf16.mxu1 %v2689_v29  ;;  %v2710_v47 = vld [vmem:[#allocation5 + $0xb0] ss:$12 sps:$4 sm:$0xff]   ;;  %v2714_v48 = vld [vmem:[#allocation5 + $0x248] ss:$12 sps:$4 sm:$0xff]   ;;  %v2719_v53 = vld [vmem:[#allocation5 + $0x260] ss:$12 sps:$4 sm:$0xff]  }
  0x5c   :  { %v2667_v49 = vld [vmem:[#allocation5 + $0x150] ss:$12 sps:$4 sm:$0xff]   ;;  %v2715_v50 = vld [vmem:[#allocation5 + $0x188] ss:$12 sps:$4 sm:$0xff]   ;;  %v2720_v56 = vld [vmem:[#allocation5 + $0x1a0] ss:$12 sps:$4 sm:$0xff]  }
  0x5d   :  { %1437 = vmatpush1.bf16.msra.mxu0 %v2637_v9  ;;  %v2670_v54 = vld [vmem:[#allocation5 + $0x168] ss:$12 sps:$4 sm:$0xff]   ;;  %v2673_v55 = vld [vmem:[#allocation5 + $0x184] ss:$12 sps:$4 sm:$0xff]   ;;  %v2671_v58 = vld [vmem:[#allocation5 + $0x180] ss:$12 sps:$4 sm:$0xff]  }
  0x5e   :  { %1438 = vmatprep.subr.bf16.mxu0 %v2638_v10  ;;  %2431 = vmatpush3.bf16.msra.mxu1 %v2690_v30  ;;  %v2724_v57 = vld [vmem:[#allocation5 + $0x278] ss:$12 sps:$4 sm:$0xff]   ;;  %v2678_v59 = vld [vmem:[#allocation5 + $0x19c] ss:$12 sps:$4 sm:$0xff]   ;;  %v2683_v63 = vld [vmem:[#allocation5 + $0x1b4] ss:$12 sps:$4 sm:$0xff]  }
  0x5f   :  { %2432 = vmatprep.subr.bf16.mxu1 %v2694_v32  ;;  %v2725_v60 = vld [vmem:[#allocation5 + $0x1b8] ss:$12 sps:$4 sm:$0xff]   ;;  %v2729_v61 = vld [vmem:[#allocation5 + $0x290] ss:$12 sps:$4 sm:$0xff]   ;;  %v2734_v1 = vld [vmem:[#allocation5 + $0x2a8] ss:$12 sps:$4 sm:$0xff]  }
  0x60   :  { %v2676_v62 = vld [vmem:[#allocation5 + $0x198] ss:$12 sps:$4 sm:$0xff]   ;;  %v2730_v0 = vld [vmem:[#allocation5 + $0x1d0] ss:$12 sps:$4 sm:$0xff]   ;;  %v2735_v4 = vld [vmem:[#allocation5 + $0x1e8] ss:$12 sps:$4 sm:$0xff]  }
  0x61   :  { %1439 = vmatpush1.bf16.msra.mxu0 %v2640_v11  ;;  %v2681_v2 = vld [vmem:[#allocation5 + $0x1b0] ss:$12 sps:$4 sm:$0xff]   ;;  %v2688_v3 = vld [vmem:[#allocation5 + $0x1cc] ss:$12 sps:$4 sm:$0xff]   ;;  %v2686_v6 = vld [vmem:[#allocation5 + $0x1c8] ss:$12 sps:$4 sm:$0xff]  }
  0x62   :  { %1440 = vmatprep.subr.bf16.mxu0 %v2641_v12  ;;  %2433 = vmatpush3.bf16.msra.mxu1 %v2695_v35  ;;  %v2739_v5 = vld [vmem:[#allocation5 + $0x2c0] ss:$12 sps:$4 sm:$0xff]   ;;  %v2693_v7 = vld [vmem:[#allocation5 + $0x1e4] ss:$12 sps:$4 sm:$0xff]   ;;  %v2755_v23 = vld [vmem:[#allocation5 + $0x308] ss:$12 sps:$4 sm:$0xff]  }
  0x63   :  { %2434 = vmatprep.subr.bf16.mxu1 %v2699_v36  ;;  %v2740_v8 = vld [vmem:[#allocation5 + $0x200] ss:$12 sps:$4 sm:$0xff]   ;;  %v2744_v11 = vld [vmem:[#allocation5 + $0x2d8] ss:$12 sps:$4 sm:$0xff]   ;;  %v2749_v16 = vld [vmem:[#allocation5 + $0x2f0] ss:$12 sps:$4 sm:$0xff]  }
  0x64   :  { %v84_v9 = vld [vmem:[#allocation2 + $0x8] sm:$0xff]  ;;  %v2745_v14 = vld [vmem:[#allocation5 + $0x218] ss:$12 sps:$4 sm:$0xff]   ;;  %v2703_v18 = vld [vmem:[#allocation5 + $0x214] ss:$12 sps:$4 sm:$0xff]   ;;  %s2176_s10 = sshll.u32 %s3041_s9, 4  ;;  %s2177_s10 = int_to_ptr.vmem [resolvable:$true] %s2176_s10 }
  0x65   :  { %1441 = vmatpush1.bf16.msra.mxu0 %v2643_v15  ;;  %v88_v10 = vld [vmem:[#allocation2 + $0x28] sm:$0xff]  ;;  %v2750_v19 = vld [vmem:[#allocation5 + $0x230] ss:$12 sps:$4 sm:$0xff]   ;;  %v2764_v29 = vld [vmem:[#allocation5 + $0x3f8] ss:$12 sps:$4 sm:$0xff]   ;;  %p3004_p5 = scmp.lt.s32.totalorder %s2177_s10, %s2177_s10 }
  0x66   :  { %1442 = vmatprep.subr.bf16.mxu0 %v2644_v17  ;;  %2435 = vmatpush3.bf16.msra.mxu1 %v2700_v39  ;;  %v2193_v12 = vcombine.high %v84_v9, %v88_v10  ;;  %v2691_v13 = vld [vmem:[#allocation5 + $0x1e0] ss:$12 sps:$4 sm:$0xff]   ;;  %v2698_v15 = vld [vmem:[#allocation5 + $0x1fc] ss:$12 sps:$4 sm:$0xff]   ;;  %v2696_v17 = vld [vmem:[#allocation5 + $0x1f8] ss:$12 sps:$4 sm:$0xff]  }
  0x67   :  { %2436 = vmatprep.subr.bf16.mxu1 %v2704_v40  ;;  %v2708_v22 = vld [vmem:[#allocation5 + $0x22c] ss:$12 sps:$4 sm:$0xff]   ;;  %v2706_v26 = vld [vmem:[#allocation5 + $0x228] ss:$12 sps:$4 sm:$0xff]   ;;  %v2770_v35 = vld [vmem:[#allocation5 + $0x350] ss:$12 sps:$4 sm:$0xff]  }
  0x68   :  { %v2759_v25 = vld [vmem:[#allocation5 + $0x3e0] ss:$12 sps:$4 sm:$0xff]   ;;  %v2765_v32 = vld [vmem:[#allocation5 + $0x338] ss:$12 sps:$4 sm:$0xff]   ;;  %v2775_v40 = vld [vmem:[#allocation5 + $0x368] ss:$12 sps:$4 sm:$0xff]  }
  0x69   :  { %1443 = vmatpush1.bf16.msra.mxu0 %v2646_v20  ;;  %v2754_v20 = vld [vmem:[#allocation5 + $0x3c8] ss:$12 sps:$4 sm:$0xff]   ;;  %v2711_v30 = vld [vmem:[#allocation5 + $0x240] ss:$12 sps:$4 sm:$0xff]  }
  0x6a   :  { %1444 = vmatprep.subr.bf16.mxu0 %v2647_v21  ;;  %2437 = vmatpush3.bf16.msra.mxu1 %v2705_v43  ;;  %v2701_v21 = vld [vmem:[#allocation5 + $0x210] ss:$12 sps:$4 sm:$0xff]   ;;  %v2723_v36 = vld [vmem:[#allocation5 + $0x274] ss:$12 sps:$4 sm:$0xff]   ;;  %v2728_v39 = vld [vmem:[#allocation5 + $0x28c] ss:$12 sps:$4 sm:$0xff]  }
  0x6b   :  { %2438 = vmatprep.subr.bf16.mxu1 %v2709_v44  ;;  %v89_v43 = vld [vmem:[#allocation2 + $0x30] sm:$0xff] }
  0x6d   :  { %1445 = vmatpush1.bf16.msra.mxu0 %v2649_v24  ;;  %v3140_v24 = vcombine.low %v84_v9, %v88_v10  ;;  %v86_v9 = vld [vmem:[#allocation2 + $0x18] sm:$0xff] }
  0x6e   :  { %1446 = vmatprep.subr.bf16.mxu0 %v2650_v27  ;;  %2439 = vmatpush3.bf16.msra.mxu1 %v2710_v47  ;;  %v2713_v27 = vld [vmem:[#allocation5 + $0x244] ss:$12 sps:$4 sm:$0xff]   ;;  %v2780_v47 = vld [vmem:[#allocation5 + $0x380] ss:$12 sps:$4 sm:$0xff]   ;;  %v90_v10 = vld [vmem:[#allocation2 + $0x38] sm:$0xff] }
  0x6f   :  { %2446 = vmatprep.subr.bf16.mxu1 %v2714_v48  ;;  %v2784_v48 = vld [vmem:[#allocation5 + $0x458] ss:$12 sps:$4 sm:$0xff]  }
  0x71   :  { %1447 = vmatpush1.bf16.msra.mxu0 %v2652_v28  ;;  %1633 = vmatmul.mubr.bf16.vlgmr.msra.gmra.mrb[0].mxu1 %v2190_v52  ;;  %v2760_v28 = vld [vmem:[#allocation5 + $0x320] ss:$12 sps:$4 sm:$0xff]  }
  0x72   :  { %1448 = vmatprep.subr.bf16.mxu0 %v2653_v31  ;;  %2447 = vmatpush3.bf16.msra.mxu1 %v2715_v50  ;;  %v2718_v31 = vld [vmem:[#allocation5 + $0x25c] ss:$12 sps:$4 sm:$0xff]  }
  0x73   :  { %2448 = vmatprep.subr.bf16.mxu1 %v2719_v53  ;;  %1673 = vmatprep.mubr.bf16.mxu1 %v2193_v12  ;;  %v2738_v50 = vld [vmem:[#allocation5 + $0x2bc] ss:$12 sps:$4 sm:$0xff]   ;;  %v2736_v53 = vld [vmem:[#allocation5 + $0x2b8] ss:$12 sps:$4 sm:$0xff]  }
  0x75   :  { %1449 = vmatpush1.bf16.msra.mxu0 %v2655_v33  ;;  %v2769_v33 = vld [vmem:[#allocation5 + $0x410] ss:$12 sps:$4 sm:$0xff]  }
  0x76   :  { %1450 = vmatprep.subr.bf16.mxu0 %v2656_v34  ;;  %2449 = vmatpush3.bf16.msra.mxu1 %v2720_v56  ;;  %v2716_v34 = vld [vmem:[#allocation5 + $0x258] ss:$12 sps:$4 sm:$0xff]   ;;  %v2794_v56 = vld [vmem:[#allocation5 + $0x548] ss:$12 sps:$4 sm:$0xff]  }
  0x77   :  { %2450 = vmatprep.subr.bf16.mxu1 %v2724_v57  ;;  %v2741_v57 = vld [vmem:[#allocation5 + $0x2d0] ss:$12 sps:$4 sm:$0xff]  }
  0x79   :  { %1451 = vmatpush1.bf16.msra.mxu0 %v2658_v37  ;;  %v2774_v37 = vld [vmem:[#allocation5 + $0x428] ss:$12 sps:$4 sm:$0xff]  }
  0x7a   :  { %1452 = vmatprep.subr.bf16.mxu0 %v2659_v38  ;;  %2451 = vmatpush3.bf16.msra.mxu1 %v2725_v60  ;;  %v2721_v38 = vld [vmem:[#allocation5 + $0x270] ss:$12 sps:$4 sm:$0xff]   ;;  %v2795_v60 = vld [vmem:[#allocation5 + $0x488] ss:$12 sps:$4 sm:$0xff]  }
  0x7b   :  { %2452 = vmatprep.subr.bf16.mxu1 %v2729_v61  ;;  %v2799_v61 = vld [vmem:[#allocation5 + $0x560] ss:$12 sps:$4 sm:$0xff]  }
  0x7d   :  { %1453 = vmatpush1.bf16.msra.mxu0 %v2661_v41  ;;  %v2779_v41 = vld [vmem:[#allocation5 + $0x440] ss:$12 sps:$4 sm:$0xff]  }
  0x7e   :  { %1454 = vmatprep.subr.bf16.mxu0 %v2662_v42  ;;  %2453 = vmatpush3.bf16.msra.mxu1 %v2730_v0  ;;  %v85_v42 = vld [vmem:[#allocation2 + $0x10] sm:$0xff] }
  0x7f   :  { %2454 = vmatprep.subr.bf16.mxu1 %v2734_v1  ;;  %v3143_v44 = vcombine.high %v85_v42, %v89_v43  ;;  %v2753_v0 = vld [vmem:[#allocation5 + $0x304] ss:$12 sps:$4 sm:$0xff]  }
  0x80   :  { %v2804_v1 = vld [vmem:[#allocation5 + $0x578] ss:$12 sps:$4 sm:$0xff]  }
  0x81   :  { %1455 = vmatpush1.bf16.msra.mxu0 %v2664_v45  ;;  %v2726_v45 = vld [vmem:[#allocation5 + $0x288] ss:$12 sps:$4 sm:$0xff]  }
  0x82   :  { %1456 = vmatprep.subr.bf16.mxu0 %v2665_v46  ;;  %2455 = vmatpush3.bf16.msra.mxu1 %v2735_v4  ;;  %v2733_v46 = vld [vmem:[#allocation5 + $0x2a4] ss:$12 sps:$4 sm:$0xff]  }
  0x83   :  { %2456 = vmatprep.subr.bf16.mxu1 %v2739_v5  ;;  %v2805_v4 = vld [vmem:[#allocation5 + $0x4b8] ss:$12 sps:$4 sm:$0xff]   ;;  %v2809_v5 = vld [vmem:[#allocation5 + $0x590] ss:$12 sps:$4 sm:$0xff]  }
  0x85   :  { %1457 = vmatpush1.bf16.msra.mxu0 %v2667_v49  ;;  %v2731_v49 = vld [vmem:[#allocation5 + $0x2a0] ss:$12 sps:$4 sm:$0xff]  }
  0x86   :  { %1458 = vmatprep.subr.bf16.mxu0 %v2668_v51  ;;  %2457 = vmatpush3.bf16.msra.mxu1 %v2740_v8  ;;  %v2785_v51 = vld [vmem:[#allocation5 + $0x398] ss:$12 sps:$4 sm:$0xff]   ;;  %v2810_v8 = vld [vmem:[#allocation5 + $0x4d0] ss:$12 sps:$4 sm:$0xff]  }
  0x87   :  { %2458 = vmatprep.subr.bf16.mxu1 %v2744_v11  ;;  %v2814_v11 = vld [vmem:[#allocation5 + $0x5a8] ss:$12 sps:$4 sm:$0xff]  }
  0x89   :  { %1459 = vmatpush1.bf16.msra.mxu0 %v2670_v54  ;;  %v2743_v54 = vld [vmem:[#allocation5 + $0x2d4] ss:$12 sps:$4 sm:$0xff]  }
  0x8a   :  { %1471 = vmatprep.subr.bf16.mxu0 %v2673_v55  ;;  %2459 = vmatpush3.bf16.msra.mxu1 %v2745_v14  ;;  %v2790_v55 = vld [vmem:[#allocation5 + $0x3b0] ss:$12 sps:$4 sm:$0xff]   ;;  %v2768_v14 = vld [vmem:[#allocation5 + $0x34c] ss:$12 sps:$4 sm:$0xff]  }
  0x8b   :  { %2460 = vmatprep.subr.bf16.mxu1 %v2749_v16  ;;  %v2819_v16 = vld [vmem:[#allocation5 + $0x5c0] ss:$12 sps:$4 sm:$0xff]  }
  0x8c   :  { %1461 = vmatmul.mubr.bf16.vlgmr.msra.gmra.mrb[0].mxu0 %v2190_v52  ;;  %v2789_v52 = vld [vmem:[#allocation5 + $0x470] ss:$12 sps:$4 sm:$0xff]  }
  0x8d   :  { %1472 = vmatpush1.bf16.msra.mxu0 %v2671_v58  ;;  %1503 = vmatprep.mubr.bf16.mxu0 %v2193_v12  ;;  %v2748_v58 = vld [vmem:[#allocation5 + $0x2ec] ss:$12 sps:$4 sm:$0xff]   ;;  %v3150_v12 = vcombine.high %v86_v9, %v90_v10 }
  0x8e   :  { %1473 = vmatprep.subr.bf16.mxu0 %v2678_v59  ;;  %2461 = vmatpush3.bf16.msra.mxu1 %v2750_v19  ;;  %v3146_v59 = vcombine.low %v85_v42, %v89_v43  ;;  %v2820_v19 = vld [vmem:[#allocation5 + $0x500] ss:$12 sps:$4 sm:$0xff]   ;;  %v2818_v42 = vld [vmem:[#allocation5 + $0x43c] ss:$12 sps:$4 sm:$0xff]   ;;  %v2816_v43 = vld [vmem:[#allocation5 + $0x438] ss:$12 sps:$4 sm:$0xff]  }
  0x8f   :  { %2468 = vmatprep.subr.bf16.mxu1 %v2754_v20  ;;  %v2824_v20 = vld [vmem:[#allocation5 + $0x5d8] ss:$12 sps:$4 sm:$0xff]  }
  0x91   :  { %1474 = vmatpush1.bf16.msra.mxu0 %v2676_v62  ;;  %1674 = vmatmul.mubr.bf16.vlgmr.msra.gmra.mrb[4].mxu1 %v3140_v24  ;;  %v2746_v62 = vld [vmem:[#allocation5 + $0x2e8] ss:$12 sps:$4 sm:$0xff]  }
  0x92   :  { %1475 = vmatprep.subr.bf16.mxu0 %v2683_v63  ;;  %2469 = vmatpush3.bf16.msra.mxu1 %v2755_v23  ;;  %v2800_v63 = vld [vmem:[#allocation5 + $0x4a0] ss:$12 sps:$4 sm:$0xff]   ;;  %v2825_v23 = vld [vmem:[#allocation5 + $0x518] ss:$12 sps:$4 sm:$0xff]  }
  0x93   :  { %2470 = vmatprep.subr.bf16.mxu1 %v2759_v25  ;;  %1714 = vmatprep.mubr.bf16.mxu1 %v3143_v44  ;;  %v2776_v25 = vld [vmem:[#allocation5 + $0x378] ss:$12 sps:$4 sm:$0xff]  }
  0x95   :  { %1476 = vmatpush1.bf16.msra.mxu0 %v2681_v2  ;;  %v2751_v2 = vld [vmem:[#allocation5 + $0x300] ss:$12 sps:$4 sm:$0xff]  }
  0x96   :  { %1477 = vmatprep.subr.bf16.mxu0 %v2688_v3  ;;  %2471 = vmatpush3.bf16.msra.mxu1 %v2760_v28  ;;  %v2758_v3 = vld [vmem:[#allocation5 + $0x31c] ss:$12 sps:$4 sm:$0xff]   ;;  %v3154_v28 = vcombine.low %v86_v9, %v90_v10  ;;  %v2867_v9 = vld [vmem:[#allocation5 + $0x5a0] ss:$12 sps:$4 sm:$0xff]  }
  0x97   :  { %2472 = vmatprep.subr.bf16.mxu1 %v2764_v29  ;;  %v2781_v29 = vld [vmem:[#allocation5 + $0x390] ss:$12 sps:$4 sm:$0xff]  }
  0x98   :  { %v2872_v10 = vld [vmem:[#allocation5 + $0x5bc] ss:$12 sps:$4 sm:$0xff]  }
  0x99   :  { %1478 = vmatpush1.bf16.msra.mxu0 %v2686_v6  ;;  %v2756_v6 = vld [vmem:[#allocation5 + $0x318] ss:$12 sps:$4 sm:$0xff]  }
  0x9a   :  { %1479 = vmatprep.subr.bf16.mxu0 %v2693_v7  ;;  %2473 = vmatpush3.bf16.msra.mxu1 %v2765_v32  ;;  %v2763_v7 = vld [vmem:[#allocation5 + $0x334] ss:$12 sps:$4 sm:$0xff]   ;;  %v2793_v32 = vld [vmem:[#allocation5 + $0x3c4] ss:$12 sps:$4 sm:$0xff]  }
  0x9b   :  { %2474 = vmatprep.subr.bf16.mxu1 %v2769_v33  ;;  %v2791_v33 = vld [vmem:[#allocation5 + $0x3c0] ss:$12 sps:$4 sm:$0xff]  }
  0x9d   :  { %1480 = vmatpush1.bf16.msra.mxu0 %v2691_v13  ;;  %v2761_v13 = vld [vmem:[#allocation5 + $0x330] ss:$12 sps:$4 sm:$0xff]  }
  0x9e   :  { %1481 = vmatprep.subr.bf16.mxu0 %v2698_v15  ;;  %2475 = vmatpush3.bf16.msra.mxu1 %v2770_v35  ;;  %v2815_v15 = vld [vmem:[#allocation5 + $0x4e8] ss:$12 sps:$4 sm:$0xff]   ;;  %v2796_v35 = vld [vmem:[#allocation5 + $0x3d8] ss:$12 sps:$4 sm:$0xff]  }
  0x9f   :  { %2476 = vmatprep.subr.bf16.mxu1 %v2774_v37  ;;  %v2801_v37 = vld [vmem:[#allocation5 + $0x3f0] ss:$12 sps:$4 sm:$0xff]  }
  0xa1   :  { %1482 = vmatpush1.bf16.msra.mxu0 %v2696_v17  ;;  %v2766_v17 = vld [vmem:[#allocation5 + $0x348] ss:$12 sps:$4 sm:$0xff]  }
  0xa2   :  { %1483 = vmatprep.subr.bf16.mxu0 %v2703_v18  ;;  %2477 = vmatpush3.bf16.msra.mxu1 %v2775_v40  ;;  %v2773_v18 = vld [vmem:[#allocation5 + $0x364] ss:$12 sps:$4 sm:$0xff]  }
  0xa3   :  { %2478 = vmatprep.subr.bf16.mxu1 %v2779_v41  ;;  %v2813_v40 = vld [vmem:[#allocation5 + $0x424] ss:$12 sps:$4 sm:$0xff]   ;;  %v2811_v41 = vld [vmem:[#allocation5 + $0x420] ss:$12 sps:$4 sm:$0xff]  }
  0xa5   :  { %1484 = vmatpush1.bf16.msra.mxu0 %v2701_v21  ;;  %v2771_v21 = vld [vmem:[#allocation5 + $0x360] ss:$12 sps:$4 sm:$0xff]  }
  0xa6   :  { %1485 = vmatprep.subr.bf16.mxu0 %v2708_v22  ;;  %2479 = vmatpush3.bf16.msra.mxu1 %v2780_v47  ;;  %v2778_v22 = vld [vmem:[#allocation5 + $0x37c] ss:$12 sps:$4 sm:$0xff]  }
  0xa7   :  { %2480 = vmatprep.subr.bf16.mxu1 %v2784_v48  ;;  %v2826_v47 = vld [vmem:[#allocation5 + $0x468] ss:$12 sps:$4 sm:$0xff]   ;;  %v2833_v48 = vld [vmem:[#allocation5 + $0x484] ss:$12 sps:$4 sm:$0xff]  }
  0xa9   :  { %1486 = vmatpush1.bf16.msra.mxu0 %v2706_v26  ;;  %v2830_v26 = vld [vmem:[#allocation5 + $0x530] ss:$12 sps:$4 sm:$0xff]  }
  0xaa   :  { %1487 = vmatprep.subr.bf16.mxu0 %v2713_v27  ;;  %2481 = vmatpush3.bf16.msra.mxu1 %v2785_v51  ;;  %v2783_v27 = vld [vmem:[#allocation5 + $0x394] ss:$12 sps:$4 sm:$0xff]   ;;  %v2834_v51 = vld [vmem:[#allocation5 + $0x498] ss:$12 sps:$4 sm:$0xff]  }
  0xab   :  { %2482 = vmatprep.subr.bf16.mxu1 %v2789_v52  ;;  %v2839_v52 = vld [vmem:[#allocation5 + $0x4b4] ss:$12 sps:$4 sm:$0xff]  }
  0xad   :  { %1488 = vmatpush1.bf16.msra.mxu0 %v2711_v30  ;;  %v2788_v30 = vld [vmem:[#allocation5 + $0x3ac] ss:$12 sps:$4 sm:$0xff]  }
  0xae   :  { %1489 = vmatprep.subr.bf16.mxu0 %v2718_v31  ;;  %2483 = vmatpush3.bf16.msra.mxu1 %v2790_v55  ;;  %v2786_v31 = vld [vmem:[#allocation5 + $0x3a8] ss:$12 sps:$4 sm:$0xff]  }
  0xaf   :  { %2490 = vmatprep.subr.bf16.mxu1 %v2794_v56  ;;  %v2840_v55 = vld [vmem:[#allocation5 + $0x4c8] ss:$12 sps:$4 sm:$0xff]   ;;  %v2845_v56 = vld [vmem:[#allocation5 + $0x4e4] ss:$12 sps:$4 sm:$0xff]  }
  0xb1   :  { %1490 = vmatpush1.bf16.msra.mxu0 %v2716_v34  ;;  %1715 = vmatmul.mubr.bf16.vlgmr.msra.gmra.mrb[8].mxu1 %v3146_v59  ;;  %v2798_v34 = vld [vmem:[#allocation5 + $0x3dc] ss:$12 sps:$4 sm:$0xff]  }
  0xb2   :  { %1491 = vmatprep.subr.bf16.mxu0 %v2723_v36  ;;  %2491 = vmatpush3.bf16.msra.mxu1 %v2795_v60  ;;  %v2803_v36 = vld [vmem:[#allocation5 + $0x3f4] ss:$12 sps:$4 sm:$0xff]  }
  0xb3   :  { %2492 = vmatprep.subr.bf16.mxu1 %v2799_v61  ;;  %1755 = vmatprep.mubr.bf16.mxu1 %v3150_v12  ;;  %v2851_v60 = vld [vmem:[#allocation5 + $0x514] ss:$12 sps:$4 sm:$0xff]   ;;  %v2849_v61 = vld [vmem:[#allocation5 + $0x510] ss:$12 sps:$4 sm:$0xff]  }
  0xb5   :  { %1492 = vmatpush1.bf16.msra.mxu0 %v2721_v38  ;;  %v2808_v38 = vld [vmem:[#allocation5 + $0x40c] ss:$12 sps:$4 sm:$0xff]  }
  0xb6   :  { %1493 = vmatprep.subr.bf16.mxu0 %v2728_v39  ;;  %2493 = vmatpush3.bf16.msra.mxu1 %v2800_v63  ;;  %v2806_v39 = vld [vmem:[#allocation5 + $0x408] ss:$12 sps:$4 sm:$0xff]  }
  0xb7   :  { %2494 = vmatprep.subr.bf16.mxu1 %v2804_v1  ;;  %v2852_v63 = vld [vmem:[#allocation5 + $0x528] ss:$12 sps:$4 sm:$0xff]   ;;  %v2855_v1 = vld [vmem:[#allocation5 + $0x540] ss:$12 sps:$4 sm:$0xff]  }
  0xb9   :  { %1494 = vmatpush1.bf16.msra.mxu0 %v2726_v45  ;;  %v2821_v45 = vld [vmem:[#allocation5 + $0x450] ss:$12 sps:$4 sm:$0xff]  }
  0xba   :  { %1495 = vmatprep.subr.bf16.mxu0 %v2733_v46  ;;  %2495 = vmatpush3.bf16.msra.mxu1 %v2805_v4  ;;  %v2828_v46 = vld [vmem:[#allocation5 + $0x46c] ss:$12 sps:$4 sm:$0xff]   ;;  %v2863_v4 = vld [vmem:[#allocation5 + $0x574] ss:$12 sps:$4 sm:$0xff]  }
  0xbb   :  { %2496 = vmatprep.subr.bf16.mxu1 %v2809_v5  ;;  %v2861_v5 = vld [vmem:[#allocation5 + $0x570] ss:$12 sps:$4 sm:$0xff]  }
  0xbd   :  { %1496 = vmatpush1.bf16.msra.mxu0 %v2731_v49  ;;  %v2831_v49 = vld [vmem:[#allocation5 + $0x480] ss:$12 sps:$4 sm:$0xff]  }
  0xbe   :  { %1497 = vmatprep.subr.bf16.mxu0 %v2738_v50  ;;  %2497 = vmatpush3.bf16.msra.mxu1 %v2810_v8  ;;  %v2836_v50 = vld [vmem:[#allocation5 + $0x49c] ss:$12 sps:$4 sm:$0xff]   ;;  %v2869_v8 = vld [vmem:[#allocation5 + $0x5a4] ss:$12 sps:$4 sm:$0xff]  }
  0xbf   :  { %2498 = vmatprep.subr.bf16.mxu1 %v2814_v11  ;;  %v2870_v11 = vld [vmem:[#allocation5 + $0x5b8] ss:$12 sps:$4 sm:$0xff]  }
  0xc1   :  { %1498 = vmatpush1.bf16.msra.mxu0 %v2736_v53  ;;  %v2837_v53 = vld [vmem:[#allocation5 + $0x4b0] ss:$12 sps:$4 sm:$0xff]  }
  0xc2   :  { %1499 = vmatprep.subr.bf16.mxu0 %v2743_v54  ;;  %2499 = vmatpush3.bf16.msra.mxu1 %v2815_v15  ;;  %v2842_v54 = vld [vmem:[#allocation5 + $0x4cc] ss:$12 sps:$4 sm:$0xff]   ;;  %v2880_v15 = vld [vmem:[#allocation7] sm:$0xff]  }
  0xc3   :  { %2500 = vmatprep.subr.bf16.mxu1 %v2819_v16  ;;  %v2881_v16 = vld [vmem:[#allocation7 + $0x48] sm:$0xff]  }
  0xc5   :  { %1500 = vmatpush1.bf16.msra.mxu0 %v2741_v57  ;;  %v2843_v57 = vld [vmem:[#allocation5 + $0x4e0] ss:$12 sps:$4 sm:$0xff]  }
  0xc6   :  { %1501 = vmatprep.subr.bf16.mxu0 %v2748_v58  ;;  %2501 = vmatpush3.bf16.msra.mxu1 %v2820_v19  ;;  %v2848_v58 = vld [vmem:[#allocation5 + $0x4fc] ss:$12 sps:$4 sm:$0xff]  }
  0xc7   :  { %2502 = vmatprep.subr.bf16.mxu1 %v2824_v20  ;;  %v2876_v19 = vld [vmem:[#allocation5 + $0x5e8] ss:$12 sps:$4 sm:$0xff]  }
  0xc8   :  { %v2883_v20 = vld [vmem:[#allocation7 + $0x50] sm:$0xff]  }
  0xc9   :  { %1502 = vmatpush1.bf16.msra.mxu0 %v2746_v62  ;;  %v2854_v62 = vld [vmem:[#allocation5 + $0x52c] ss:$12 sps:$4 sm:$0xff]  }
  0xca   :  { %1514 = vmatprep.subr.bf16.mxu0 %v2753_v0  ;;  %2503 = vmatpush3.bf16.msra.mxu1 %v2825_v23  ;;  %v2857_v0 = vld [vmem:[#allocation5 + $0x544] ss:$12 sps:$4 sm:$0xff]   ;;  %v2886_v23 = vld [vmem:[#allocation7 + $0x18] sm:$0xff]  }
  0xcc   :  { %1504 = vmatmul.mubr.bf16.vlgmr.msra.gmra.mrb[0].mxu0 %v3140_v24  ;;  %v2829_v24 = vld [vmem:[#allocation5 + $0x5f0] ss:$12 sps:$4 sm:$0xff]  }
  0xcd   :  { %1515 = vmatpush1.bf16.msra.mxu0 %v2751_v2  ;;  %1546 = vmatprep.mubr.bf16.mxu0 %v3143_v44  ;;  %v2823_v44 = vld [vmem:[#allocation5 + $0x454] ss:$12 sps:$4 sm:$0xff]   ;;  %v2860_v2 = vld [vmem:[#allocation5 + $0x55c] ss:$12 sps:$4 sm:$0xff]  }
  0xce   :  { %1516 = vmatprep.subr.bf16.mxu0 %v2758_v3  ;;  %2504 = vmatprep.subr.bf16.mxu1 %v2829_v24  ;;  %v2858_v3 = vld [vmem:[#allocation5 + $0x558] ss:$12 sps:$4 sm:$0xff]  }
  0xcf   :  { %2505 = vmatpush3.bf16.msra.mxu1 %v2830_v26  ;;  %v2887_v24 = vld [vmem:[#allocation7 + $0x60] sm:$0xff]   ;;  %v2889_v26 = vld [vmem:[#allocation7 + $0x68] sm:$0xff]  }
  0xd1   :  { %1517 = vmatpush1.bf16.msra.mxu0 %v2756_v6  ;;  %v2866_v6 = vld [vmem:[#allocation5 + $0x58c] ss:$12 sps:$4 sm:$0xff]  }
  0xd2   :  { %1518 = vmatprep.subr.bf16.mxu0 %v2763_v7  ;;  %1756 = vmatmul.mubr.bf16.vlgmr.msra.gmra.mrb[12].mxu1 %v3154_v28  ;;  %v2864_v7 = vld [vmem:[#allocation5 + $0x588] ss:$12 sps:$4 sm:$0xff]  }
  0xd5   :  { %1519 = vmatpush1.bf16.msra.mxu0 %v2761_v13  ;;  %v2873_v13 = vld [vmem:[#allocation5 + $0x5d0] ss:$12 sps:$4 sm:$0xff]  }
  0xd6   :  { %1520 = vmatprep.subr.bf16.mxu0 %v2768_v14  ;;  %v2879_v14 = vld [vmem:[#allocation7 + $0x40] sm:$0xff]  }
  0xd7   :  { %2512 = vmatprep.subr.bf16.mxu1 %v2879_v14 }
  0xd8   :  { %2513 = vmatpush3.bf16.msra.mxu1 %v2880_v15 }
  0xd9   :  { %1521 = vmatpush1.bf16.msra.mxu0 %v2766_v17  ;;  %v2878_v17 = vld [vmem:[#allocation5 + $0x5ec] ss:$12 sps:$4 sm:$0xff]   ;;  %2514 = vmatprep.subr.bf16.mxu1 %v2881_v16 }
  0xda   :  { %1522 = vmatprep.subr.bf16.mxu0 %v2773_v18  ;;  %v2882_v18 = vld [vmem:[#allocation7 + $0x8] sm:$0xff]  }
  0xdc   :  { %2515 = vmatpush3.bf16.msra.mxu1 %v2882_v18 }
  0xdd   :  { %1523 = vmatpush1.bf16.msra.mxu0 %v2771_v21  ;;  %v2884_v21 = vld [vmem:[#allocation7 + $0x10] sm:$0xff]   ;;  %2516 = vmatprep.subr.bf16.mxu1 %v2883_v20 }
  0xde   :  { %1524 = vmatprep.subr.bf16.mxu0 %v2778_v22  ;;  %v2885_v22 = vld [vmem:[#allocation7 + $0x58] sm:$0xff]  }
  0xe0   :  { %2517 = vmatpush3.bf16.msra.mxu1 %v2884_v21 }
  0xe1   :  { %1525 = vmatpush1.bf16.msra.mxu0 %v2776_v25  ;;  %2518 = vmatprep.subr.bf16.mxu1 %v2885_v22  ;;  %v2888_v25 = vld [vmem:[#allocation7 + $0x20] sm:$0xff]  }
  0xe2   :  { %1526 = vmatprep.subr.bf16.mxu0 %v2783_v27  ;;  %v2890_v27 = vld [vmem:[#allocation7 + $0x28] sm:$0xff]  }
  0xe4   :  { %2519 = vmatpush3.bf16.msra.mxu1 %v2886_v23 }
  0xe5   :  { %1527 = vmatpush1.bf16.msra.mxu0 %v2781_v29  ;;  %2520 = vmatprep.subr.bf16.mxu1 %v2887_v24 }
  0xe6   :  { %1528 = vmatprep.subr.bf16.mxu0 %v2788_v30 }
  0xe8   :  { %2521 = vmatpush3.bf16.msra.mxu1 %v2888_v25 }
  0xe9   :  { %1529 = vmatpush1.bf16.msra.mxu0 %v2786_v31  ;;  %2522 = vmatprep.subr.bf16.mxu1 %v2889_v26 }
  0xea   :  { %1530 = vmatprep.subr.bf16.mxu0 %v2793_v32 }
  0xec   :  { %2523 = vmatpush3.bf16.msra.mxu1 %v2890_v27  ;;  %v2895_v27 = vld [vmem:[#allocation7 + $0x80] sm:$0xff]  }
  0xed   :  { %1531 = vmatpush1.bf16.msra.mxu0 %v2791_v33 }
  0xee   :  { %1532 = vmatprep.subr.bf16.mxu0 %v2798_v34 }
  0xf1   :  { %1533 = vmatpush1.bf16.msra.mxu0 %v2796_v35  ;;  %v349_v35 = vlaneseq }
  0xf2   :  { %1534 = vmatprep.subr.bf16.mxu0 %v2803_v36 }
  0xf5   :  { %1535 = vmatpush1.bf16.msra.mxu0 %v2801_v37  ;;  %v347_v37 = vld [vmem:[%s3203_s2] sm:$0x7] }
  0xf6   :  { %1536 = vmatprep.subr.bf16.mxu0 %v2808_v38 }
  0xf9   :  { %1537 = vmatpush1.bf16.msra.mxu0 %v2806_v39 }
  0xfa   :  { %1538 = vmatprep.subr.bf16.mxu0 %v2813_v40 }
  0xfd   :  { %1539 = vmatpush1.bf16.msra.mxu0 %v2811_v41 }
  0xfe   :  { %1540 = vmatprep.subr.bf16.mxu0 %v2818_v42 }
 0x101   :  { %1541 = vmatpush1.bf16.msra.mxu0 %v2816_v43 }
 0x102   :  { %1542 = vmatprep.subr.bf16.mxu0 %v2823_v44 }
 0x105   :  { %1543 = vmatpush1.bf16.msra.mxu0 %v2821_v45 }
 0x106   :  { %1544 = vmatprep.subr.bf16.mxu0 %v2828_v46 }
 0x109   :  { %1545 = vmatpush1.bf16.msra.mxu0 %v2826_v47 }
 0x10a   :  { %1557 = vmatprep.subr.bf16.mxu0 %v2833_v48 }
 0x10c   :  { %1547 = vmatmul.mubr.bf16.vlgmr.msra.gmra.mrb[0].mxu0 %v3146_v59  ;;  %v2846_v59 = vld [vmem:[#allocation5 + $0x4f8] ss:$12 sps:$4 sm:$0xff]  }
 0x10d   :  { %1558 = vmatpush1.bf16.msra.mxu0 %v2831_v49  ;;  %1589 = vmatprep.mubr.bf16.mxu0 %v3150_v12  ;;  %v2875_v12 = vld [vmem:[#allocation5 + $0x5d4] ss:$12 sps:$4 sm:$0xff]  }
 0x10e   :  { %1559 = vmatprep.subr.bf16.mxu0 %v2836_v50 }
 0x111   :  { %1560 = vmatpush1.bf16.msra.mxu0 %v2834_v51 }
 0x112   :  { %1561 = vmatprep.subr.bf16.mxu0 %v2839_v52 }
 0x115   :  { %1562 = vmatpush1.bf16.msra.mxu0 %v2837_v53 }
 0x116   :  { %1563 = vmatprep.subr.bf16.mxu0 %v2842_v54 }
 0x119   :  { %1564 = vmatpush1.bf16.msra.mxu0 %v2840_v55 }
 0x11a   :  { %1565 = vmatprep.subr.bf16.mxu0 %v2845_v56 }
 0x11d   :  { %1566 = vmatpush1.bf16.msra.mxu0 %v2843_v57  ;;  %v2891_v57 = vld [vmem:[#allocation7 + $0x70] sm:$0xff]  }
 0x11e   :  { %1567 = vmatprep.subr.bf16.mxu0 %v2848_v58  ;;  %v2892_v58 = vld [vmem:[#allocation7 + $0x30] sm:$0xff]   ;;  %2524 = vmatprep.subr.bf16.mxu1 %v2891_v57 }
 0x11f   :  { %2525 = vmatpush3.bf16.msra.mxu1 %v2892_v58 }
 0x121   :  { %1568 = vmatpush1.bf16.msra.mxu0 %v2846_v59  ;;  %v2893_v59 = vld [vmem:[#allocation7 + $0x78] sm:$0xff]  }
 0x122   :  { %1569 = vmatprep.subr.bf16.mxu0 %v2851_v60  ;;  %v2894_v60 = vld [vmem:[#allocation7 + $0x38] sm:$0xff]   ;;  %2526 = vmatprep.subr.bf16.mxu1 %v2893_v59 }
 0x123   :  { %2527 = vmatpush3.bf16.msra.mxu1 %v2894_v60 }
 0x125   :  { %1570 = vmatpush1.bf16.msra.mxu0 %v2849_v61  ;;  %v3039_v61 = vmov 0.0  }
 0x126   :  { %1571 = vmatprep.subr.bf16.mxu0 %v2854_v62  ;;  %2552 = vmatprep.subr.bf16.mxu1 %v3039_v61 }
 0x129   :  { %1572 = vmatpush1.bf16.msra.mxu0 %v2852_v63 }
 0x12a   :  { %1573 = vmatprep.subr.bf16.mxu0 %v2857_v0 }
 0x12d   :  { %1574 = vmatpush1.bf16.msra.mxu0 %v2855_v1 }
 0x12e   :  { %1575 = vmatprep.subr.bf16.mxu0 %v2860_v2 }
 0x131   :  { %1576 = vmatpush1.bf16.msra.mxu0 %v2858_v3 }
 0x132   :  { %1577 = vmatprep.subr.bf16.mxu0 %v2863_v4 }
 0x135   :  { %1578 = vmatpush1.bf16.msra.mxu0 %v2861_v5 }
 0x136   :  { %1579 = vmatprep.subr.bf16.mxu0 %v2866_v6 }
 0x139   :  { %1580 = vmatpush1.bf16.msra.mxu0 %v2864_v7 }
 0x13a   :  { %1581 = vmatprep.subr.bf16.mxu0 %v2869_v8 }
 0x13d   :  { %1582 = vmatpush1.bf16.msra.mxu0 %v2867_v9 }
 0x13e   :  { %1583 = vmatprep.subr.bf16.mxu0 %v2872_v10 }
 0x141   :  { %1584 = vmatpush1.bf16.msra.mxu0 %v2870_v11 }
 0x142   :  { %1585 = vmatprep.subr.bf16.mxu0 %v2875_v12 }
 0x144   :  { %v2440_v29 = vpop.f32.mrb[0].mxu1 }
 0x145   :  { %1586 = vmatpush1.bf16.msra.mxu0 %v2873_v13  ;;  %v2441_v30 = vpop.f32.mrb[1].mxu1 }
 0x146   :  { %1587 = vmatprep.subr.bf16.mxu0 %v2878_v17  ;;  %v2442_v31 = vadd.f32 %v2441_v30, %v2440_v29  ;;  %v2443_v32 = vpop.f32.mrb[2].mxu1  ;;  %v2896_v29 = vld [vmem:[#allocation7 + $0x88] sm:$0xff]   ;;  %v2897_v30 = vld [vmem:[#allocation7 + $0x90] sm:$0xff]  }
 0x147   :  { %v2444_v33 = vpop.f32.mrb[3].mxu1 }
 0x148   :  { %v2445_v34 = vadd.f32 %v2444_v33, %v2443_v32  ;;  %v2899_v32 = vld [vmem:[#allocation7 + $0xa0] sm:$0xff]   ;;  %v2900_v33 = vld [vmem:[#allocation7 + $0xa8] sm:$0xff]  }
 0x149   :  { %1588 = vmatpush1.bf16.msra.mxu0 %v2876_v19 }
 0x14c   :  { %1590 = vmatmul.mubr.bf16.vlgmr.msra.gmra.mrb[0].mxu0 %v3154_v28  ;;  %v350_v28 = vshrl.u32 %v349_v35, 7  ;;  %v2902_v35 = vld [vmem:[#allocation7 + $0xb8] sm:$0xff]  }
 0x14e   :  { %v359_v36 = vsub.s32 2, %v350_v28  ;;  %v351_v9 = vsub.s32 0, %v350_v28  ;;  %v355_v10 = vsub.s32 1, %v350_v28  ;;  %v2903_v28 = vld [vmem:[#allocation8] sm:$0xff]  }
 0x150   :  { %v360_v38 = vrot.slane %v347_v37, %v359_v36  ;;  %v352_v11 = vrot.slane %v347_v37, %v351_v9  ;;  %v356_v12 = vrot.slane %v347_v37, %v355_v10  ;;  %v2904_v36 = vld [vmem:[#allocation8 + $0x8] sm:$0xff]   ;;  %v2905_v37 = vld [vmem:[#allocation8 + $0x10] sm:$0xff]  }
 0x152   :  { %v1635_v39 = vadd.f32 %v2442_v31, %v360_v38  ;;  %v1638_v42 = vadd.f32 %v2445_v34, %v360_v38  ;;  %v2898_v31 = vld [vmem:[#allocation7 + $0x98] sm:$0xff]   ;;  %v2901_v34 = vld [vmem:[#allocation7 + $0xb0] sm:$0xff]  }
 0x153   :  { %v2906_v38 = vld [vmem:[#allocation8 + $0x18] sm:$0xff]  }
 0x164   :  { %v2462_v40 = vpop.f32.mrb[4].mxu1 }
 0x165   :  { %v2463_v41 = vpop.f32.mrb[5].mxu1 }
 0x166   :  { %v2464_v43 = vadd.f32 %v2463_v41, %v2462_v40  ;;  %v2465_v44 = vpop.f32.mrb[6].mxu1  ;;  %v2908_v40 = vld [vmem:[#allocation8 + $0x28] sm:$0xff]   ;;  %v2909_v41 = vld [vmem:[#allocation8 + $0x30] sm:$0xff]  }
 0x167   :  { %v2466_v45 = vpop.f32.mrb[7].mxu1 }
 0x168   :  { %v1676_v46 = vadd.f32 %v2464_v43, %v1635_v39  ;;  %v2467_v47 = vadd.f32 %v2466_v45, %v2465_v44  ;;  %v2907_v39 = vld [vmem:[#allocation8 + $0x20] sm:$0xff]  }
 0x16a   :  { %v1679_v48 = vadd.f32 %v2467_v47, %v1638_v42  ;;  %v2910_v42 = vld [vmem:[#allocation8 + $0x38] sm:$0xff]  }
 0x184   :  { %v2484_v49 = vpop.f32.mrb[8].mxu1 }
 0x185   :  { %v2485_v50 = vpop.f32.mrb[9].mxu1 }
 0x186   :  { %v2486_v51 = vadd.f32 %v2485_v50, %v2484_v49  ;;  %v2487_v52 = vpop.f32.mrb[10].mxu1  ;;  %v2390_v49 = vld [vmem:[%s3205_s4] ss:$0 sm:$0xff]  ;;  %s2999_s4 = scalar_lea.vmem %s2177_s10, 256 }
 0x187   :  { %v2488_v53 = vpop.f32.mrb[11].mxu1  ;;  %p3000_p4 = scmp.ne.s32.totalorder %s2177_s10, %s2999_s4  ;;  %p3005_p6 = scmp.lt.s32.totalorder %s2999_s4, %s2999_s4 }
 0x188   :  { %v1717_v54 = vadd.f32 %v2486_v51, %v1676_v46  ;;  %v2489_v55 = vadd.f32 %v2488_v53, %v2487_v52 }
 0x189   :  { %p3006_p7 = por %p3005_p6, %p3004_p5 }
 0x18a   :  { %v1720_v56 = vadd.f32 %v2489_v55, %v1679_v48 }
 0x18b   :  { %p3007_p8 = pnand %p3006_p7, %p3000_p4 }
 0x1a5   :  { %v2506_v62 = vpop.f32.mrb[12].mxu1 }
 0x1a6   :  { %v2507_v63 = vpop.f32.mrb[13].mxu1 }
 0x1a7   :  { %v2508_v0 = vadd.f32 %v2507_v63, %v2506_v62  ;;  %v2509_v1 = vpop.f32.mrb[14].mxu1 }
 0x1a8   :  { %v2510_v2 = vpop.f32.mrb[15].mxu1 }
 0x1a9   :  { %v1758_v3 = vadd.f32 %v2508_v0, %v1717_v54  ;;  %v2511_v4 = vadd.f32 %v2510_v2, %v2509_v1 }
 0x1ab   :  { %v1766_v5 = vmax.f32 %v1758_v3, 0.0  ;;  %v1761_v6 = vadd.f32 %v2511_v4, %v1720_v56 }
 0x1ad   :  { %v1769_v7 = vmax.f32 %v1761_v6, 0.0 }
 0x1af   :  { %v1772_v8 = vpack.c.bf16 %v1769_v7, %v1766_v5 }
 0x21f   :  { %v1591_v13 = vpop.f32.mrb[0].mxu0 }
 0x220   :  { %v2592_v14 = vadd.f32 %v1591_v13, %v352_v11  ;;  %v1593_v15 = vpop.f32.mrb[1].mxu0 }
 0x221   :  { %v2593_v16 = vadd.f32 %v1593_v15, %v356_v12  ;;  %v1595_v17 = vpop.f32.mrb[2].mxu0 }
 0x222   :  { %v2594_v18 = vadd.f32 %v1595_v17, %v352_v11  ;;  %v1597_v19 = vpop.f32.mrb[3].mxu0  ;;  %v1764_v21 = vmax.f32 %v2592_v14, 0.0 }
 0x223   :  { %v2595_v20 = vadd.f32 %v1597_v19, %v356_v12  ;;  %v1765_v23 = vmax.f32 %v2593_v16, 0.0 }
 0x224   :  { %v1767_v22 = vmax.f32 %v2594_v18, 0.0 }
 0x225   :  { %v1768_v24 = vmax.f32 %v2595_v20, 0.0 }
 0x226   :  { %v1770_v25 = vpack.c.bf16 %v1767_v22, %v1764_v21 }
 0x227   :  { %v1771_v26 = vpack.c.bf16 %v1768_v24, %v1765_v23 }
 0x229   :  { %2004 = vmatprep.mubr.bf16.mxu1 %v1771_v26 }
 0x22a   :  { %2005 = vmatmul.mubr.bf16.vlgmr.msra.gmra.mrb[16].mxu1 %v1770_v25 }
 0x22b   :  { %2553 = vmatpush3.bf16.msra.mxu1 %v2895_v27  ;;  %2568 = vmatprep.mubr.msk.bf16.mxu1 %vm3040_vm0, %v3039_v61 }
 0x22c   :  { %2554 = vmatprep.subr.bf16.mxu1 %v3039_v61 }
 0x22f   :  { %2555 = vmatpush3.bf16.msra.mxu1 %v2896_v29 }
 0x230   :  { %2556 = vmatprep.subr.bf16.mxu1 %v3039_v61 }
 0x233   :  { %2557 = vmatpush3.bf16.msra.mxu1 %v2897_v30 }
 0x234   :  { %2558 = vmatprep.subr.bf16.mxu1 %v3039_v61 }
 0x237   :  { %2559 = vmatpush3.bf16.msra.mxu1 %v2898_v31 }
 0x238   :  { %2560 = vmatprep.subr.bf16.mxu1 %v3039_v61 }
 0x23b   :  { %2561 = vmatpush3.bf16.msra.mxu1 %v2899_v32 }
 0x23c   :  { %2562 = vmatprep.subr.bf16.mxu1 %v3039_v61 }
 0x23f   :  { %2563 = vmatpush3.bf16.msra.mxu1 %v2900_v33 }
 0x240   :  { %2564 = vmatprep.subr.bf16.mxu1 %v3039_v61 }
 0x243   :  { %2565 = vmatpush3.bf16.msra.mxu1 %v2901_v34 }
 0x244   :  { %2566 = vmatprep.subr.bf16.mxu1 %v3039_v61 }
 0x247   :  { %2567 = vmatpush3.bf16.msra.mxu1 %v2902_v35 }
 0x248   :  { %2572 = vmatprep.subr.bf16.mxu1 %v3039_v61 }
 0x24a   :  { %2569 = vmatmul.mubr.bf16.vlgmr.msra.gmra.mrb[20].mxu1 %v1772_v8 }
 0x24b   :  { %2588 = vmatprep.mubr.msk.bf16.mxu1 %vm3040_vm0, %v3039_v61  ;;  %2573 = vmatpush3.bf16.msra.mxu1 %v2903_v28 }
 0x24c   :  { %2574 = vmatprep.subr.bf16.mxu1 %v3039_v61 }
 0x24f   :  { %2575 = vmatpush3.bf16.msra.mxu1 %v2904_v36 }
 0x250   :  { %2576 = vmatprep.subr.bf16.mxu1 %v3039_v61 }
 0x253   :  { %2577 = vmatpush3.bf16.msra.mxu1 %v2905_v37 }
 0x254   :  { %2578 = vmatprep.subr.bf16.mxu1 %v3039_v61 }
 0x257   :  { %2579 = vmatpush3.bf16.msra.mxu1 %v2906_v38 }
 0x258   :  { %2580 = vmatprep.subr.bf16.mxu1 %v3039_v61 }
 0x25b   :  { %2581 = vmatpush3.bf16.msra.mxu1 %v2907_v39 }
 0x25c   :  { %2582 = vmatprep.subr.bf16.mxu1 %v3039_v61 }
 0x25f   :  { %2583 = vmatpush3.bf16.msra.mxu1 %v2908_v40 }
 0x260   :  { %2584 = vmatprep.subr.bf16.mxu1 %v3039_v61 }
 0x263   :  { %2585 = vmatpush3.bf16.msra.mxu1 %v2909_v41 }
 0x264   :  { %2586 = vmatprep.subr.bf16.mxu1 %v3039_v61  ;;  %v2415_v61 = vld [vmem:[%s3207_s6] ss:$0 sm:$0xff] }
 0x267   :  { %2587 = vmatpush3.bf16.msra.mxu1 %v2910_v42 }
 0x2fd   :  { %v2528_v43 = vpop.f32.mrb[16].mxu1 }
 0x2fe   :  { %v2529_v44 = vpop.f32.mrb[17].mxu1 }
 0x2ff   :  { %v2530_v45 = vadd.f32 %v2529_v44, %v2528_v43  ;;  %v2531_v46 = vpop.f32.mrb[18].mxu1 }
 0x300   :  { %v2532_v47 = vpop.f32.mrb[19].mxu1 }
 0x301   :  { %v2533_v48 = vadd.f32 %v2532_v47, %v2531_v46  ;;  %v2007_v50 = vadd.f32 %v2530_v45, %v2390_v49 }
 0x303   :  { %v2010_v54 = vadd.f32 %v2533_v48, %v2390_v49 }
 0x31d   :  { %v2047_v51 = vpop.f32.mrb[20].mxu1 }
 0x31e   :  { %v2048_v52 = vadd.f32 %v2047_v51, %v2007_v50  ;;  %v2570_v53 = vpop.f32.mrb[21].mxu1 }
 0x31f   :  { %v2050_v55 = vpop.f32.mrb[22].mxu1 }
 0x320   :  { %v2051_v56 = vadd.f32 %v2050_v55, %v2010_v54  ;;  %v2571_v57 = vpop.f32.mrb[23].mxu1  ;;  %v2054_v58 = vmax.f32 %v2048_v52, 0.0 }
 0x322   :  { %v2055_v59 = vmax.f32 %v2051_v56, 0.0 }
 0x324   :  { %v2056_v60 = vpack.c.bf16 %v2055_v59, %v2054_v58 }
 0x326   :  { %2589 = vmatmul.mubr.bf16.vlgmr.msra.gmra.mrb[24].mxu1 %v2056_v60 }
 0x3f9   :  { %v2162_v62 = vpop.f32.mrb[24].mxu1 }
 0x3fa   :  { %v2163_v63 = vadd.f32 %v2415_v61, %v2162_v62  ;;  %v2590_v0 = vpop.f32.mrb[25].mxu1 }
 0x3fb   :  { %v2165_v1 = vpop.f32.mrb[26].mxu1 }
 0x3fc   :  { %2169 = vst [vmem:[#allocation10] sm:$0xff] %v2163_v63  ;;  %v2166_v2 = vadd.f32 %v2415_v61, %v2165_v1  ;;  %v2591_v3 = vpop.f32.mrb[27].mxu1 }
 0x3fe   :  { %2170 = vst [vmem:[#allocation10 + $0x8] sm:$0xff] %v2166_v2 }
 0x3ff   :  { %3010 = shalt.err (!%p3007_p8)
}
 0x400   :  { %s3011_s12 = scalar_lea.hbm %s3208_s7, 256 }
 0x401   :  { %p3012_p9 = scmp.ne.s32.totalorder %s3208_s7, %s3011_s12  ;;  %p3015_p10 = scmp.lt.u32.totalorder %s3011_s12, %s3208_s7 }
 0x403   :  { %p3017_p11 = pnand %p3015_p10, %p3012_p9 }
 0x405   :  { %3020 = shalt.err (!%p3017_p11)
}
 0x406   :  { %s3042_s16 = smov 128   ;;  %s3043_s17 = smov 8  }
 0x407   :  { %2182 = dma.vmem_to_hbm [thread:$0]  %s2177_s10, 256, %s3208_s7, [#allocation4], %s3042_s16, %s3042_s16, %s3043_s17  }
 0x408   :  { %3027 = dma.done.wait [#allocation4], 256  }
 0x409   :  { %3028 = vsyncadd [#allocation4], 4294967040 }
 0x40a   :  { %2186 = vsyncpa [#allocation3], 1 }
 0x40b   :  { %2187 = vsyncpa [#allocation6], 1 }
 0x40c   :  { %2188 = vsyncpa [#allocation9], 1 }
 0x40d   :  { %2189 = vsyncpa [#allocation4], 1 }

</bundles_post_ra>
